<compile_context>
chip_gen: v7x
topology: tpu7x:2x2x1
jax: 0.10.0
libtpu: 0.0.40
codegen_flags: <defaults>
</compile_context>

<pallas_src>
import functools

import jax
import jax.numpy as jnp
from jax.experimental import pallas as pl
from jax.experimental.pallas import tpu as pltpu


# ------------------------------ tiling helpers -------------------------------
def _round_up(x, m):
    return (x + m - 1) // m * m


def _pick_tile(n_pad, candidates):
    for c in candidates:
        if c <= n_pad and n_pad % c == 0:
            return c
    return n_pad


def _choose_tiles(n):
    n_pad = _round_up(max(n, 1), 128)
    tm = _pick_tile(n_pad, (256, 128))        # output node-row tile (sublanes)
    tk = _pick_tile(n_pad, (512, 256, 128))   # contraction tile (lanes of A)
    return n_pad, tm, tk


# ------------------------------ Pallas kernels --------------------------------
def _xw_kernel(x_ref, w_ref, o_ref):
    """Feature transform XW = X @ W (W zero-padded to 128-lane multiples)."""
    o_ref[...] = jnp.dot(x_ref[...], w_ref[...],
                         preferred_element_type=jnp.float32).astype(o_ref.dtype)


def xw_matmul(x_pad, w_pad, *, tm):
    n_pad, f_in = x_pad.shape
    fp = w_pad.shape[1]
    return pl.pallas_call(
        _xw_kernel,
        out_shape=jax.ShapeDtypeStruct((n_pad, fp), jnp.bfloat16),
        grid=(n_pad // tm,),
        in_specs=[
            pl.BlockSpec((tm, f_in), lambda i: (i, 0)),
            pl.BlockSpec((f_in, fp), lambda i: (0, 0)),
        ],
        out_specs=pl.BlockSpec((tm, fp), lambda i: (i, 0)),
        compiler_params=pltpu.CompilerParams(
            dimension_semantics=("parallel",),
            vmem_limit_bytes=32 * 1024 * 1024),
    )(x_pad.astype(jnp.float32), w_pad.astype(jnp.float32))


def _gcn_agg_kernel(a_ref, xw_ref, b_ref, o_ref, acc_ref, *, activation, f_out):
    """Accumulate A_hat_tile @ XW_slab; finalize with bias + activation."""
    k = pl.program_id(1)

    @pl.when(k == 0)
    def _init():
        acc_ref[...] = jnp.zeros_like(acc_ref)

    # bf16 x bf16 MXU matmul with f32 accumulation.
    acc_ref[...] += jnp.dot(a_ref[...], xw_ref[...],
                            preferred_element_type=jnp.float32)

    @pl.when(k == pl.num_programs(1) - 1)
    def _finalize():
        z = acc_ref[...] + b_ref[...]                      # f32 epilogue
        if activation == "relu":
            o_ref[...] = jnp.maximum(z, 0.0)
        else:  # log_softmax over the *valid* feature lanes only
            lane = jax.lax.broadcasted_iota(jnp.int32, z.shape, 1)
            valid = lane < f_out
            zm = jnp.where(valid, z, -jnp.inf)
            m = jnp.max(zm, axis=-1, keepdims=True)
            e = jnp.where(valid, jnp.exp(zm - m), 0.0)
            lse = jnp.log(jnp.sum(e, axis=-1, keepdims=True)) + m
            o_ref[...] = jnp.where(valid, z - lse, 0.0)


def gcn_aggregate(a_pad_bf16, xw_bf16, b_pad, *, activation, f_out, tm, tk):
    n_pad = a_pad_bf16.shape[0]
    fp = xw_bf16.shape[1]
    kernel = functools.partial(_gcn_agg_kernel, activation=activation,
                               f_out=f_out)
    return pl.pallas_call(
        kernel,
        out_shape=jax.ShapeDtypeStruct((n_pad, fp), jnp.float32),
        grid_spec=pltpu.PrefetchScalarGridSpec(
            num_scalar_prefetch=0,
            grid=(n_pad // tm, n_pad // tk),
            in_specs=[
                pl.BlockSpec((tm, tk), lambda i, k: (i, k)),   # A_hat tile
                pl.BlockSpec((tk, fp), lambda i, k: (k, 0)),   # XW slab
                pl.BlockSpec((1, fp), lambda i, k: (0, 0)),    # bias row
            ],
            out_specs=pl.BlockSpec((tm, fp), lambda i, k: (i, 0)),
            scratch_shapes=[pltpu.VMEM((tm, fp), jnp.float32)]),
        compiler_params=pltpu.CompilerParams(
            dimension_semantics=("parallel", "arbitrary"),
            vmem_limit_bytes=32 * 1024 * 1024),
    )(a_pad_bf16, xw_bf16, b_pad.astype(jnp.float32))


# ------------------------------ model wrapper ---------------------------------
def build_normalized_adj(edge_index, num_nodes):
    """Dense GCN normalization: A_hat = D^{-1/2} (A + I) D^{-1/2}."""
    src, dst = edge_index
    a = jnp.zeros((num_nodes, num_nodes), jnp.float32)
    a = a.at[src, dst].set(1.0)
    a = a.at[dst, src].set(1.0)                      # treat graph as undirected
    eye = jnp.eye(num_nodes, dtype=jnp.float32)
    a = jnp.where(eye > 0, 0.0, a) + eye             # exactly one self-loop
    deg = jnp.sum(a, axis=1)
    d_inv_sqrt = 1.0 / jnp.sqrt(jnp.maximum(deg, 1e-12))
    return a * d_inv_sqrt[:, None] * d_inv_sqrt[None, :]


def init_params(key, input_dim, hidden_dim, output_dim, num_layers=2):
    dims = [input_dim] + [hidden_dim] * (num_layers - 1) + [output_dim]
    params = []
    for i in range(num_layers):
        key, k_w = jax.random.split(key)
        fan_in, fan_out = dims[i], dims[i + 1]
        scale = jnp.sqrt(6.0 / (fan_in + fan_out))   # glorot-uniform
        w = jax.random.uniform(k_w, (fan_in, fan_out), jnp.float32,
                               -scale, scale)
        b = jnp.zeros((fan_out,), jnp.float32)
        params.append((w, b))
    return params


def victim_model_forward(params, x, edge_index):
    """Eval-mode forward pass of VictimModel (dropout = identity)."""
    n = x.shape[0]
    n_pad, tm, tk = _choose_tiles(n)

    # TODO(synk): for large sparse graphs, replace the dense N x N A_hat stream
    # with a scalar-prefetch (CSR) gather SpMM to cut HBM traffic to O(N*d*F).
    a_hat = build_normalized_adj(edge_index, n)
    a_pad = jnp.zeros((n_pad, n_pad), jnp.float32).at[:n, :n].set(a_hat)
    a_pad = a_pad.astype(jnp.bfloat16)               # halve the HBM stream

    # Activations stay lane-padded between layers; padded node rows and padded
    # feature lanes are exact zeros throughout.
    h = jnp.zeros((n_pad, x.shape[1]), jnp.float32).at[:n, :].set(
        x.astype(jnp.float32))
    cur_width = x.shape[1]

    num_layers = len(params)
    for li, (w, b) in enumerate(params):
        f_in, f_out = w.shape
        fp = _round_up(f_out, 128)                   # lane-dense outputs
        # Pad W rows up to the (possibly lane-padded) current width; padded
        # rows are zero, so padded activation lanes contribute nothing.
        w_pad = jnp.zeros((cur_width, fp), jnp.float32).at[:f_in, :f_out].set(w)
        b_pad = jnp.zeros((1, fp), jnp.float32).at[0, :f_out].set(b)

        xw = xw_matmul(h, w_pad, tm=tm)              # (n_pad, fp) bf16
        activation = "log_softmax" if li == num_layers - 1 else "relu"
        h = gcn_aggregate(a_pad, xw, b_pad, activation=activation,
                          f_out=f_out, tm=tm, tk=tk)  # (n_pad, fp) f32
        cur_width = fp
        # F.dropout(p=0.25, training=False) is the identity at inference.

    return h[:n, :params[-1][0].shape[1]]


# ----------------------------------- main --------------------------------------
if __name__ == "__main__":
    key = jax.random.PRNGKey(0)

    num_nodes = 16
    input_dim, hidden_dim, output_dim, num_layers = 8, 32, 4, 2

    k_x, k_p = jax.random.split(key)
    x = jax.random.normal(k_x, (num_nodes, input_dim), jnp.float32)

    # Deterministic ring graph: node i <-> node (i+1) % N
    src = jnp.arange(num_nodes, dtype=jnp.int32)
    dst = (src + 1) % num_nodes
    edge_index = jnp.stack([src, dst], axis=0)       # (2, E)

    params = init_params(k_p, input_dim, hidden_dim, output_dim, num_layers)

    out = victim_model_forward(params, x, edge_index)
    jax.block_until_ready(out)

    assert out.shape == (num_nodes, output_dim)
    # log_softmax rows should exponentiate-sum to ~1
    row_sums = jnp.sum(jnp.exp(out), axis=1)
    assert bool(jnp.all(jnp.abs(row_sums - 1.0) < 1e-3))

    print("KERNEL_OK")
</pallas_src>

<mosaic_0001>
module attributes {stable_mosaic.version = 11 : i64} {
  func.func @_xw_kernel(%arg0: i32, %arg1: memref<128x8xf32, #tpu.memory_space<vmem>>, %arg2: memref<8x128xf32, #tpu.memory_space<vmem>>, %arg3: memref<128x128xbf16, #tpu.memory_space<vmem>>) attributes {dimension_semantics = [#tpu.dimension_semantics<parallel>], iteration_bounds = array<i64: 1>, scalar_prefetch = 0 : i64, scratch_operands = 0 : i64, tpu.core_type = #tpu.core_type<tc>, window_params = [{transform_indices = @transform_0, window_bounds = array<i64: 128, 8>}, {pipeline_mode = #tpu.pipeline_mode<synchronous>, transform_indices = @transform_1, window_bounds = array<i64: 8, 128>}, {transform_indices = @transform_2, window_bounds = array<i64: 128, 128>}]} {
    %c0 = arith.constant 0 : index
    %c0_0 = arith.constant 0 : index
    %0 = vector.load %arg1[%c0, %c0_0] : memref<128x8xf32, #tpu.memory_space<vmem>>, vector<128x8xf32>
    %c0_1 = arith.constant 0 : index
    %c0_2 = arith.constant 0 : index
    %1 = vector.load %arg2[%c0_1, %c0_2] : memref<8x128xf32, #tpu.memory_space<vmem>>, vector<8x128xf32>
    %cst = arith.constant dense<0.000000e+00> : vector<128x128xf32>
    %2 = tpu.matmul %0, %1, %cst {dimension_numbers = #tpu.dot_dimension_numbers<[1], [0], [0], [1], [0, 0, 1, 1], [], []>} : vector<128x8xf32>, vector<8x128xf32>, vector<128x128xf32> -> vector<128x128xf32>
    %3 = arith.truncf %2 : vector<128x128xf32> to vector<128x128xbf16>
    %c0_3 = arith.constant 0 : index
    %c0_4 = arith.constant 0 : index
    %4 = vector.load %arg3[%c0_3, %c0_4] : memref<128x128xbf16, #tpu.memory_space<vmem>>, vector<128x128xbf16>
    tpu.vector_store %arg3[%c0_3, %c0_4], %3 {strides = array<i32>} : memref<128x128xbf16, #tpu.memory_space<vmem>>, vector<128x128xbf16>,
    return
  }
  func.func @transform_0(%arg0: i32) -> (i32, i32) {
    %c0_i32 = arith.constant 0 : i32
    %c0_i32_0 = arith.constant 0 : i32
    return %arg0, %c0_i32 : i32, i32
  }
  func.func @transform_1(%arg0: i32) -> (i32, i32) {
    %c0_i32 = arith.constant 0 : i32
    %c0_i32_0 = arith.constant 0 : i32
    %c0_i32_1 = arith.constant 0 : i32
    return %c0_i32, %c0_i32_0 : i32, i32
  }
  func.func @transform_2(%arg0: i32) -> (i32, i32) {
    %c0_i32 = arith.constant 0 : i32
    %c0_i32_0 = arith.constant 0 : i32
    return %arg0, %c0_i32 : i32, i32
  }
}

</mosaic_0001>

<bundles_post_ra>
// kernel: tpu_custom_call.1
= control target key start
LH: loop header
LB: loop body
LE: loop exit
PB: predicated region body
PF: predicated region fallthrough
CT: control target
= control target key end

     0   :  { %vm29_vm0 = vcmask 64512   ;;  %s583_s0 = inlined_call_operand.vmem [shape: f32[128,8], index: 0, kind: input, shape index: {}]   ;;  %s584_s1 = inlined_call_operand.vmem [shape: f32[8,128], index: 1, kind: input, shape index: {}]   ;;  %s585_s2 = inlined_call_operand.hbm [shape: bf16[128,128], index: 2, kind: output, shape index: {}]  }
   0x1   :  { %v28_v0 = vld [vmem:[%s584_s1] sm:$0xff]  ;;  %v13_v3 = vld [vmem:[%s583_s0 + $0x8] sm:$0xff]  ;;  %v14_v5 = vld [vmem:[%s583_s0 + $0x10] sm:$0xff] }
   0x2   :  { %v12_v1 = vld [vmem:[%s583_s0] sm:$0xff]  ;;  %431 = vmatprep.subr.mxu0 %v28_v0  ;;  %457 = vmatprep.subr.mxu1 %v28_v0  ;;  %v21_v4 = vld [vmem:[%s583_s0 + $0x48] sm:$0xff]  ;;  %v22_v6 = vld [vmem:[%s583_s0 + $0x50] sm:$0xff] }
   0x3   :  { %v20_v2 = vld [vmem:[%s583_s0 + $0x40] sm:$0xff]  ;;  %432 = vmatpush3.msra.mxu0 %v28_v0  ;;  %458 = vmatpush3.msra.mxu1 %v28_v0  ;;  %v15_v7 = vld [vmem:[%s583_s0 + $0x18] sm:$0xff] }
   0x4   :  { %433 = vmatprep.mubr.msk.f32.mxu0 %vm29_vm0, %v12_v1  ;;  %445 = vmatprep.mubr.msk.f32.mxu1 %vm29_vm0, %v20_v2  ;;  %v23_v8 = vld [vmem:[%s583_s0 + $0x58] sm:$0xff] }
   0x5   :  { %434 = vmatmul.mubr.msk.f32.vlgmr.msra.gmra.mrb[0].mxu0 %vm29_vm0, %v13_v3  ;;  %446 = vmatmul.mubr.msk.f32.vlgmr.msra.gmra.mrb[0].mxu1 %vm29_vm0, %v21_v4 }
   0x6   :  { %436 = vmatprep.mubr.msk.f32.mxu0 %vm29_vm0, %v14_v5  ;;  %448 = vmatprep.mubr.msk.f32.mxu1 %vm29_vm0, %v22_v6 }
   0x7   :  { %7 = vsyncpa [#allocation3], 0  ;;  %v16_v9 = vld [vmem:[%s583_s0 + $0x20] sm:$0xff]  ;;  %v17_v11 = vld [vmem:[%s583_s0 + $0x28] sm:$0xff] }
   0x8   :  { %v24_v10 = vld [vmem:[%s583_s0 + $0x60] sm:$0xff]  ;;  %v25_v12 = vld [vmem:[%s583_s0 + $0x68] sm:$0xff]  ;;  %v18_v13 = vld [vmem:[%s583_s0 + $0x30] sm:$0xff] }
   0x9   :  { %437 = vmatmul.mubr.msk.f32.gmra.mrb[2].mxu0 %vm29_vm0, %v15_v7  ;;  %449 = vmatmul.mubr.msk.f32.gmra.mrb[2].mxu1 %vm29_vm0, %v23_v8  ;;  %v26_v14 = vld [vmem:[%s583_s0 + $0x70] sm:$0xff]  ;;  %v19_v15 = vld [vmem:[%s583_s0 + $0x38] sm:$0xff] }
   0xa   :  { %439 = vmatprep.mubr.msk.f32.mxu0 %vm29_vm0, %v16_v9  ;;  %451 = vmatprep.mubr.msk.f32.mxu1 %vm29_vm0, %v24_v10  ;;  %v27_v16 = vld [vmem:[%s583_s0 + $0x78] sm:$0xff]  ;;  %s486_s0 = smov [#allocation2]  }
   0xb   :  { %s308_s14 = sshll.u32 %s486_s0, 4  ;;  %s309_s14 = int_to_ptr.vmem [resolvable:$true] %s308_s14 }
   0xc   :  { %s462_s15 = scalar_lea.vmem %s309_s14, 1024  ;;  %p467_p1 = scmp.lt.s32.totalorder %s309_s14, %s309_s14 }
   0xd   :  { %440 = vmatmul.mubr.msk.f32.gmra.mrb[4].mxu0 %vm29_vm0, %v17_v11  ;;  %452 = vmatmul.mubr.msk.f32.gmra.mrb[4].mxu1 %vm29_vm0, %v25_v12  ;;  %p463_p0 = scmp.ne.s32.totalorder %s309_s14, %s462_s15  ;;  %p468_p2 = scmp.lt.s32.totalorder %s462_s15, %s462_s15 }
   0xe   :  { %442 = vmatprep.mubr.msk.f32.mxu0 %vm29_vm0, %v18_v13  ;;  %454 = vmatprep.mubr.msk.f32.mxu1 %vm29_vm0, %v26_v14 }
   0xf   :  { %p469_p3 = por %p468_p2, %p467_p1 }
  0x11   :  { %443 = vmatmul.mubr.msk.f32.gmra.mrb[6].mxu0 %vm29_vm0, %v19_v15  ;;  %455 = vmatmul.mubr.msk.f32.gmra.mrb[6].mxu1 %vm29_vm0, %v27_v16  ;;  %p470_p4 = pnand %p469_p3, %p463_p0 }
  0xd8   :  { %v435_v17 = vpop.f32.mrb[0].mxu0  ;;  %v447_v18 = vpop.f32.mrb[0].mxu1 }
  0xd9   :  { %v144_v19 = vpop.f32.mrb[1].mxu0  ;;  %v184_v20 = vpop.f32.mrb[1].mxu1 }
  0xda   :  { %v370_v21 = vpack.c.bf16 %v435_v17, %v144_v19  ;;  %v390_v22 = vpack.c.bf16 %v447_v18, %v184_v20 }
  0xdc   :  { %371 = vst [vmem:[#allocation2] sm:$0xff] %v370_v21   ;;  %410 = vst [vmem:[#allocation2 + $0x20] sm:$0xff] %v390_v22   ;;  %v438_v23 = vpop.f32.mrb[2].mxu0  ;;  %v450_v24 = vpop.f32.mrb[2].mxu1 }
  0xdd   :  { %v154_v25 = vpop.f32.mrb[3].mxu0  ;;  %v194_v26 = vpop.f32.mrb[3].mxu1 }
  0xde   :  { %v375_v27 = vpack.c.bf16 %v438_v23, %v154_v25  ;;  %v395_v28 = vpack.c.bf16 %v450_v24, %v194_v26 }
  0xe0   :  { %407 = vst [vmem:[#allocation2 + $0x8] sm:$0xff] %v375_v27   ;;  %411 = vst [vmem:[#allocation2 + $0x28] sm:$0xff] %v395_v28   ;;  %v441_v29 = vpop.f32.mrb[4].mxu0  ;;  %v453_v30 = vpop.f32.mrb[4].mxu1 }
  0xe1   :  { %v164_v31 = vpop.f32.mrb[5].mxu0  ;;  %v204_v32 = vpop.f32.mrb[5].mxu1 }
  0xe2   :  { %v380_v33 = vpack.c.bf16 %v441_v29, %v164_v31  ;;  %v400_v34 = vpack.c.bf16 %v453_v30, %v204_v32 }
  0xe4   :  { %408 = vst [vmem:[#allocation2 + $0x10] sm:$0xff] %v380_v33   ;;  %412 = vst [vmem:[#allocation2 + $0x30] sm:$0xff] %v400_v34   ;;  %v444_v35 = vpop.f32.mrb[6].mxu0  ;;  %v456_v36 = vpop.f32.mrb[6].mxu1 }
  0xe5   :  { %v174_v37 = vpop.f32.mrb[7].mxu0  ;;  %v214_v38 = vpop.f32.mrb[7].mxu1 }
  0xe6   :  { %v385_v39 = vpack.c.bf16 %v444_v35, %v174_v37  ;;  %v405_v40 = vpack.c.bf16 %v456_v36, %v214_v38 }
  0xe8   :  { %409 = vst [vmem:[#allocation2 + $0x18] sm:$0xff] %v385_v39   ;;  %413 = vst [vmem:[#allocation2 + $0x38] sm:$0xff] %v405_v40  }
  0xe9   :  { %473 = shalt.err (!%p470_p4)
}
  0xea   :  { %s474_s18 = scalar_lea.hbm %s585_s2, 1024 }
  0xeb   :  { %p475_p5 = scmp.ne.s32.totalorder %s585_s2, %s474_s18  ;;  %p478_p6 = scmp.lt.u32.totalorder %s474_s18, %s585_s2 }
  0xed   :  { %p480_p7 = pnand %p478_p6, %p475_p5 }
  0xef   :  { %483 = shalt.err (!%p480_p7)
}
  0xf0   :  { %s487_s22 = smov 64   ;;  %s488_s23 = smov 4  }
  0xf1   :  { %314 = dma.vmem_to_hbm [thread:$0]  %s309_s14, 1024, %s585_s2, [#allocation3], %s487_s22, %s487_s22, %s488_s23  }
  0xf2   :  { %484 = dma.done.wait [#allocation3], 1024  }
  0xf3   :  { %485 = vsyncadd [#allocation3], 4294966272 }
  0xf4   :  { %318 = vsyncpa [#allocation3], 1 }

</bundles_post_ra>
